<compile_context>
chip_gen: v5e
topology: v5e:2x2
jax: 0.10.0
libtpu: 0.0.40
codegen_flags: <defaults>
</compile_context>

<pallas_src>
import functools

import jax
import jax.numpy as jnp
import numpy as np
from jax.experimental import pallas as pl
from jax.experimental.pallas import tpu as pltpu

EPS = 1e-5
_VMEM_LIMIT_BYTES = 48 * 1024 * 1024   # stays under v7x's 64 MiB physical VMEM
_TILE_BUDGET_BYTES = 4 * 1024 * 1024   # per-tile row-data budget (x2 double buffering)


# ------------------------------ small helpers ------------------------------ #

def _round_up(x, m):
    return (x + m - 1) // m * m


def _pick_rows(n_rows, bytes_per_row):
    """Rows per M tile: multiple of 8, sized against a per-tile VMEM budget."""
    r = max(8, (_TILE_BUDGET_BYTES // max(bytes_per_row, 1)) // 8 * 8)
    return min(r, _round_up(n_rows, 8))


def _pad_rows(x, tile):
    m = x.shape[0]
    mp = _round_up(m, tile)
    return x if mp == m else jnp.pad(x, ((0, mp - m), (0, 0)))


def _cparams(sem):
    return pltpu.CompilerParams(dimension_semantics=sem,
                                vmem_limit_bytes=_VMEM_LIMIT_BYTES)


def _bn(y, ssum, ssq, g, b, count):
    """Train-mode BN from accumulated per-channel sum / sum-of-squares."""
    inv = 1.0 / count
    mean = ssum * inv
    var = ssq * inv - mean * mean                    # one-pass biased variance
    return (y - mean) * jax.lax.rsqrt(var + EPS) * g + b


# ----------------------------- Pallas kernels ------------------------------ #

def _matmul_stats_kernel(x_ref, w_ref, y_ref, ssum_ref, ssq_ref):
    """conv1 pass A: y = x @ w (bf16 MXU, f32 acc) + per-channel sum / sumsq."""
    @pl.when(pl.program_id(0) == 0)
    def _():
        ssum_ref[...] = jnp.zeros_like(ssum_ref)
        ssq_ref[...] = jnp.zeros_like(ssq_ref)

    y = jnp.dot(x_ref[...].astype(jnp.bfloat16), w_ref[...],
                preferred_element_type=jnp.float32)
    y_ref[...] = y
    ssum_ref[...] += jnp.sum(y, axis=0, keepdims=True)
    ssq_ref[...] += jnp.sum(y * y, axis=0, keepdims=True)


def _bn_relu_kernel(y_ref, ssum_ref, ssq_ref, g_ref, b_ref, o_ref, *, count):
    """BN1 pass B: normalize + ReLU over M tiles."""
    o_ref[...] = jnp.maximum(
        _bn(y_ref[...], ssum_ref[...], ssq_ref[...], g_ref[...], b_ref[...],
            count), 0.0)


def _conv3x3_stats_kernel(a_ref, w_ref, y_ref, ssum_ref, ssq_ref,
                          *, stride, ho, wo):
    """3x3 conv (pad=1 already in the haloed block) + BN2 stats, per image.

    Nine shifted taps of the VMEM-resident haloed block each feed a
    (ho*wo, C) @ (C, C) MXU matmul — no im2col ever hits HBM.
    """
    @pl.when(pl.program_id(0) == 0)
    def _():
        ssum_ref[...] = jnp.zeros_like(ssum_ref)
        ssq_ref[...] = jnp.zeros_like(ssq_ref)

    c = w_ref.shape[-1]
    acc = jnp.zeros((ho * wo, c), jnp.float32)
    for k in range(9):
        dy, dx = k // 3, k % 3
        if stride == 1:
            tap = a_ref[pl.ds(dy, ho), pl.ds(dx, wo), :]
        else:
            tap = a_ref[pl.ds(dy, ho, stride=stride),
                        pl.ds(dx, wo, stride=stride), :]
        acc = acc + jnp.dot(tap.reshape(ho * wo, c).astype(jnp.bfloat16),
                            w_ref[k], preferred_element_type=jnp.float32)
    y_ref[...] = acc
    ssum_ref[...] += jnp.sum(acc, axis=0, keepdims=True)
    ssq_ref[...] += jnp.sum(acc * acc, axis=0, keepdims=True)


def _bn_conv1x1_stats_kernel(y2_ref, s2s_ref, s2q_ref, g2_ref, b2_ref, w3_ref,
                             y3_ref, s3s_ref, s3q_ref, *, count):
    """BN2 + ReLU fused with conv3 (1x1) + BN3 stats, per image (identity)."""
    @pl.when(pl.program_id(0) == 0)
    def _():
        s3s_ref[...] = jnp.zeros_like(s3s_ref)
        s3q_ref[...] = jnp.zeros_like(s3q_ref)

    a2 = jnp.maximum(_bn(y2_ref[...], s2s_ref[...], s2q_ref[...],
                         g2_ref[...], b2_ref[...], count), 0.0)
    y3 = jnp.dot(a2.astype(jnp.bfloat16), w3_ref[...],
                 preferred_element_type=jnp.float32)
    y3_ref[...] = y3
    s3s_ref[...] += jnp.sum(y3, axis=0, keepdims=True)
    s3q_ref[...] += jnp.sum(y3 * y3, axis=0, keepdims=True)


def _bn_conv1x1_proj_stats_kernel(y2_ref, s2s_ref, s2q_ref, g2_ref, b2_ref,
                                  w3_ref, x_ref, ws_ref,
                                  y3_ref, s3s_ref, s3q_ref,
                                  ysc_ref, sss_ref, ssq_ref,
                                  *, count, stride, ho, wo):
    """As above + the projection-shortcut 1x1 conv (strided in-kernel read of
    the resident x block) + its BN stats — shares the M tile already in VMEM."""
    @pl.when(pl.program_id(0) == 0)
    def _():
        s3s_ref[...] = jnp.zeros_like(s3s_ref)
        s3q_ref[...] = jnp.zeros_like(s3q_ref)
        sss_ref[...] = jnp.zeros_like(sss_ref)
        ssq_ref[...] = jnp.zeros_like(ssq_ref)

    a2 = jnp.maximum(_bn(y2_ref[...], s2s_ref[...], s2q_ref[...],
                         g2_ref[...], b2_ref[...], count), 0.0)
    y3 = jnp.dot(a2.astype(jnp.bfloat16), w3_ref[...],
                 preferred_element_type=jnp.float32)
    y3_ref[...] = y3
    s3s_ref[...] += jnp.sum(y3, axis=0, keepdims=True)
    s3q_ref[...] += jnp.sum(y3 * y3, axis=0, keepdims=True)

    if stride == 1:
        xs = x_ref[...]
    else:
        xs = x_ref[pl.ds(0, ho, stride=stride), pl.ds(0, wo, stride=stride), :]
    cin = xs.shape[-1]
    ysc = jnp.dot(xs.reshape(ho * wo, cin).astype(jnp.bfloat16), ws_ref[...],
                  preferred_element_type=jnp.float32)
    ysc_ref[...] = ysc
    sss_ref[...] += jnp.sum(ysc, axis=0, keepdims=True)
    ssq_ref[...] += jnp.sum(ysc * ysc, axis=0, keepdims=True)


def _final_proj_kernel(y3_ref, s3s_ref, s3q_ref, g3_ref, b3_ref,
                       ysc_ref, sss_ref, ssq_ref, gs_ref, bs_ref, o_ref,
                       *, count):
    """BN3 + shortcut-BN + add + ReLU over M tiles (projection shortcut)."""
    r = _bn(y3_ref[...], s3s_ref[...], s3q_ref[...], g3_ref[...], b3_ref[...],
            count)
    s = _bn(ysc_ref[...], sss_ref[...], ssq_ref[...], gs_ref[...], bs_ref[...],
            count)
    o_ref[...] = jnp.maximum(r + s, 0.0)


def _final_identity_kernel(y3_ref, s3s_ref, s3q_ref, g3_ref, b3_ref, sc_ref,
                           o_ref, *, count):
    """BN3 + identity-shortcut add + ReLU over M tiles."""
    r = _bn(y3_ref[...], s3s_ref[...], s3q_ref[...], g3_ref[...], b3_ref[...],
            count)
    o_ref[...] = jnp.maximum(r + sc_ref[...], 0.0)


# --------------------------- pallas_call wrappers --------------------------- #

def _conv1x1_stats(x_flat, w):
    m, cin = x_flat.shape
    cout = w.shape[1]
    tm = _pick_rows(m, 4 * (cin + cout))
    xp = _pad_rows(x_flat, tm)
    mp = xp.shape[0]
    return pl.pallas_call(
        _matmul_stats_kernel,
        grid=(mp // tm,),
        in_specs=[pl.BlockSpec((tm, cin), lambda i: (i, 0)),
                  pl.BlockSpec((cin, cout), lambda i: (0, 0))],
        out_specs=(pl.BlockSpec((tm, cout), lambda i: (i, 0)),
                   pl.BlockSpec((1, cout), lambda i: (0, 0)),
                   pl.BlockSpec((1, cout), lambda i: (0, 0))),
        out_shape=(jax.ShapeDtypeStruct((mp, cout), jnp.float32),
                   jax.ShapeDtypeStruct((1, cout), jnp.float32),
                   jax.ShapeDtypeStruct((1, cout), jnp.float32)),
        compiler_params=_cparams(("arbitrary",)),
        cost_estimate=pl.CostEstimate(
            flops=2 * mp * cin * cout + 4 * mp * cout,
            transcendentals=0,
            bytes_accessed=4 * mp * (cin + cout) + 2 * cin * cout + 8 * cout),
    )(xp, w.astype(jnp.bfloat16))


def _bn_relu(y, ssum, ssq, g, b, count):
    m, c = y.shape
    tm = _pick_rows(m, 8 * c)
    yp = _pad_rows(y, tm)
    mp = yp.shape[0]
    return pl.pallas_call(
        functools.partial(_bn_relu_kernel, count=count),
        grid=(mp // tm,),
        in_specs=[pl.BlockSpec((tm, c), lambda i: (i, 0)),
                  pl.BlockSpec((1, c), lambda i: (0, 0)),
                  pl.BlockSpec((1, c), lambda i: (0, 0)),
                  pl.BlockSpec((1, c), lambda i: (0, 0)),
                  pl.BlockSpec((1, c), lambda i: (0, 0))],
        out_specs=pl.BlockSpec((tm, c), lambda i: (i, 0)),
        out_shape=jax.ShapeDtypeStruct((mp, c), jnp.float32),
        compiler_params=_cparams(("parallel",)),
        cost_estimate=pl.CostEstimate(flops=8 * mp * c, transcendentals=c,
                                      bytes_accessed=4 * (2 * mp * c + 4 * c)),
    )(yp, ssum, ssq, g.reshape(1, -1), b.reshape(1, -1))


def _conv3x3_stats(a_pad, w2, ho, wo, stride):
    n, hp, wp, c = a_pad.shape
    w2r = w2.reshape(9, c, c).astype(jnp.bfloat16)
    return pl.pallas_call(
        functools.partial(_conv3x3_stats_kernel, stride=stride, ho=ho, wo=wo),
        grid=(n,),
        in_specs=[pl.BlockSpec((None, hp, wp, c), lambda i: (i, 0, 0, 0)),
                  pl.BlockSpec((9, c, c), lambda i: (0, 0, 0))],
        out_specs=(pl.BlockSpec((None, ho * wo, c), lambda i: (i, 0, 0)),
                   pl.BlockSpec((1, c), lambda i: (0, 0)),
                   pl.BlockSpec((1, c), lambda i: (0, 0))),
        out_shape=(jax.ShapeDtypeStruct((n, ho * wo, c), jnp.float32),
                   jax.ShapeDtypeStruct((1, c), jnp.float32),
                   jax.ShapeDtypeStruct((1, c), jnp.float32)),
        compiler_params=_cparams(("arbitrary",)),
        cost_estimate=pl.CostEstimate(
            flops=2 * n * ho * wo * 9 * c * c + 4 * n * ho * wo * c,
            transcendentals=0,
            bytes_accessed=4 * n * (hp * wp + ho * wo) * c + 18 * c * c + 8 * c),
    )(a_pad, w2r)


def _bn2_conv3_stats(y2, s2s, s2q, g2, b2, w3, count):
    n, m_img, c = y2.shape
    cexp = w3.shape[1]
    return pl.pallas_call(
        functools.partial(_bn_conv1x1_stats_kernel, count=count),
        grid=(n,),
        in_specs=[pl.BlockSpec((None, m_img, c), lambda i: (i, 0, 0)),
                  pl.BlockSpec((1, c), lambda i: (0, 0)),
                  pl.BlockSpec((1, c), lambda i: (0, 0)),
                  pl.BlockSpec((1, c), lambda i: (0, 0)),
                  pl.BlockSpec((1, c), lambda i: (0, 0)),
                  pl.BlockSpec((c, cexp), lambda i: (0, 0))],
        out_specs=(pl.BlockSpec((None, m_img, cexp), lambda i: (i, 0, 0)),
                   pl.BlockSpec((1, cexp), lambda i: (0, 0)),
                   pl.BlockSpec((1, cexp), lambda i: (0, 0))),
        out_shape=(jax.ShapeDtypeStruct((n, m_img, cexp), jnp.float32),
                   jax.ShapeDtypeStruct((1, cexp), jnp.float32),
                   jax.ShapeDtypeStruct((1, cexp), jnp.float32)),
        compiler_params=_cparams(("arbitrary",)),
        cost_estimate=pl.CostEstimate(
            flops=2 * n * m_img * c * cexp + 12 * n * m_img * c,
            transcendentals=c,
            bytes_accessed=4 * n * m_img * (c + cexp) + 2 * c * cexp
                           + 16 * c + 8 * cexp),
    )(y2, s2s, s2q, g2.reshape(1, -1), b2.reshape(1, -1),
      w3.astype(jnp.bfloat16))


def _bn2_conv3_shortcut_stats(y2, s2s, s2q, g2, b2, w3, x_img, ws,
                              stride, ho, wo, count):
    n, m_img, c = y2.shape
    cexp = w3.shape[1]
    _, h, w_, cin = x_img.shape
    return pl.pallas_call(
        functools.partial(_bn_conv1x1_proj_stats_kernel, count=count,
                          stride=stride, ho=ho, wo=wo),
        grid=(n,),
        in_specs=[pl.BlockSpec((None, m_img, c), lambda i: (i, 0, 0)),
                  pl.BlockSpec((1, c), lambda i: (0, 0)),
                  pl.BlockSpec((1, c), lambda i: (0, 0)),
                  pl.BlockSpec((1, c), lambda i: (0, 0)),
                  pl.BlockSpec((1, c), lambda i: (0, 0)),
                  pl.BlockSpec((c, cexp), lambda i: (0, 0)),
                  pl.BlockSpec((None, h, w_, cin), lambda i: (i, 0, 0, 0)),
                  pl.BlockSpec((cin, cexp), lambda i: (0, 0))],
        out_specs=(pl.BlockSpec((None, m_img, cexp), lambda i: (i, 0, 0)),
                   pl.BlockSpec((1, cexp), lambda i: (0, 0)),
                   pl.BlockSpec((1, cexp), lambda i: (0, 0)),
                   pl.BlockSpec((None, m_img, cexp), lambda i: (i, 0, 0)),
                   pl.BlockSpec((1, cexp), lambda i: (0, 0)),
                   pl.BlockSpec((1, cexp), lambda i: (0, 0))),
        out_shape=(jax.ShapeDtypeStruct((n, m_img, cexp), jnp.float32),
                   jax.ShapeDtypeStruct((1, cexp), jnp.float32),
                   jax.ShapeDtypeStruct((1, cexp), jnp.float32),
                   jax.ShapeDtypeStruct((n, m_img, cexp), jnp.float32),
                   jax.ShapeDtypeStruct((1, cexp), jnp.float32),
                   jax.ShapeDtypeStruct((1, cexp), jnp.float32)),
        compiler_params=_cparams(("arbitrary",)),
        cost_estimate=pl.CostEstimate(
            flops=2 * n * m_img * (c + cin) * cexp + 12 * n * m_img * c,
            transcendentals=c,
            bytes_accessed=4 * n * (m_img * (c + 2 * cexp) + h * w_ * cin)
                           + 2 * (c + cin) * cexp + 16 * c + 16 * cexp),
    )(y2, s2s, s2q, g2.reshape(1, -1), b2.reshape(1, -1),
      w3.astype(jnp.bfloat16), x_img, ws.astype(jnp.bfloat16))


def _final_add_relu_proj(y3_flat, s3s, s3q, g3, b3, ysc_flat, sss, ssq, gs, bs,
                         count):
    m, cexp = y3_flat.shape
    tm = _pick_rows(m, 12 * cexp)
    y3p = _pad_rows(y3_flat, tm)
    yscp = _pad_rows(ysc_flat, tm)
    mp = y3p.shape[0]
    return pl.pallas_call(
        functools.partial(_final_proj_kernel, count=count),
        grid=(mp // tm,),
        in_specs=[pl.BlockSpec((tm, cexp), lambda i: (i, 0))]
                 + [pl.BlockSpec((1, cexp), lambda i: (0, 0))] * 4
                 + [pl.BlockSpec((tm, cexp), lambda i: (i, 0))]
                 + [pl.BlockSpec((1, cexp), lambda i: (0, 0))] * 4,
        out_specs=pl.BlockSpec((tm, cexp), lambda i: (i, 0)),
        out_shape=jax.ShapeDtypeStruct((mp, cexp), jnp.float32),
        input_output_aliases={0: 0},
        compiler_params=_cparams(("parallel",)),
        cost_estimate=pl.CostEstimate(flops=20 * mp * cexp,
                                      transcendentals=2 * cexp,
                                      bytes_accessed=4 * (3 * mp + 16) * cexp),
    )(y3p, s3s, s3q, g3.reshape(1, -1), b3.reshape(1, -1),
      yscp, sss, ssq, gs.reshape(1, -1), bs.reshape(1, -1))


def _final_add_relu_identity(y3_flat, s3s, s3q, g3, b3, sc_flat, count):
    m, cexp = y3_flat.shape
    tm = _pick_rows(m, 12 * cexp)
    y3p = _pad_rows(y3_flat, tm)
    scp = _pad_rows(sc_flat, tm)
    mp = y3p.shape[0]
    return pl.pallas_call(
        functools.partial(_final_identity_kernel, count=count),
        grid=(mp // tm,),
        in_specs=[pl.BlockSpec((tm, cexp), lambda i: (i, 0))]
                 + [pl.BlockSpec((1, cexp), lambda i: (0, 0))] * 4
                 + [pl.BlockSpec((tm, cexp), lambda i: (i, 0))],
        out_specs=pl.BlockSpec((tm, cexp), lambda i: (i, 0)),
        out_shape=jax.ShapeDtypeStruct((mp, cexp), jnp.float32),
        input_output_aliases={0: 0},
        compiler_params=_cparams(("parallel",)),
        cost_estimate=pl.CostEstimate(flops=12 * mp * cexp,
                                      transcendentals=cexp,
                                      bytes_accessed=4 * (3 * mp + 8) * cexp),
    )(y3p, s3s, s3q, g3.reshape(1, -1), b3.reshape(1, -1), scp)


# ------------------------------- forward pass ------------------------------- #

def bottleneck_forward(x_nchw, params, stride):
    x = jnp.transpose(x_nchw, (0, 2, 3, 1)).astype(jnp.float32)   # -> NHWC
    n, h, w, cin = x.shape
    c = params["w1"].shape[1]
    cexp = params["w3"].shape[1]
    ho = (h - 1) // stride + 1
    wo = (w - 1) // stride + 1
    m1 = n * h * w
    m2 = n * ho * wo

    # conv1 (1x1): M-tiled matmul pass + BN1 statistics
    y1, s1s, s1q = _conv1x1_stats(x.reshape(m1, cin), params["w1"])

    # BN1 + ReLU normalize pass, back to spatial + 1-pixel zero halo
    a1 = _bn_relu(y1, s1s, s1q, params["g1"], params["b1"], m1)
    a1 = a1[:m1].reshape(n, h, w, c)
    a1p = jnp.pad(a1, ((0, 0), (1, 1), (1, 1), (0, 0)))

    # conv2 (3x3, stride, pad=1): in-VMEM 9-tap matmuls + BN2 statistics
    y2, s2s, s2q = _conv3x3_stats(a1p, params["w2"], ho, wo, stride)

    # BN2+ReLU fused with conv3 (1x1) + BN3 stats (+ shortcut conv + its stats)
    proj = (stride != 1) or (cin != cexp)
    if proj:
        y3, s3s, s3q, ysc, sss, ssq = _bn2_conv3_shortcut_stats(
            y2, s2s, s2q, params["g2"], params["b2"], params["w3"],
            x, params["ws"], stride, ho, wo, m2)
        out = _final_add_relu_proj(
            y3.reshape(m2, cexp), s3s, s3q, params["g3"], params["b3"],
            ysc.reshape(m2, cexp), sss, ssq, params["gs"], params["bs"], m2)
    else:
        y3, s3s, s3q = _bn2_conv3_stats(
            y2, s2s, s2q, params["g2"], params["b2"], params["w3"], m2)
        out = _final_add_relu_identity(
            y3.reshape(m2, cexp), s3s, s3q, params["g3"], params["b3"],
            x.reshape(m2, cexp), m2)

    out = out[:m2].reshape(n, ho, wo, cexp)
    return jnp.transpose(out, (0, 3, 1, 2))                       # -> NCHW


def init_params(key, in_channels, out_channels):
    c, cexp = out_channels, 4 * out_channels
    ks = jax.random.split(key, 12)

    def w(k, shape, fan_in):
        return jax.random.normal(k, shape, jnp.float32) / np.sqrt(fan_in)

    return dict(
        w1=w(ks[0], (in_channels, c), in_channels),      # 1x1 conv -> (Cin, C)
        w2=w(ks[1], (3, 3, c, c), 9 * c),                # 3x3 conv, HWIO
        w3=w(ks[2], (c, cexp), c),                       # 1x1 conv -> (C, 4C)
        ws=w(ks[3], (in_channels, cexp), in_channels),   # shortcut 1x1 conv
        g1=jax.random.uniform(ks[4], (c,), jnp.float32, 0.5, 1.5),
        b1=0.1 * jax.random.normal(ks[5], (c,), jnp.float32),
        g2=jax.random.uniform(ks[6], (c,), jnp.float32, 0.5, 1.5),
        b2=0.1 * jax.random.normal(ks[7], (c,), jnp.float32),
        g3=jax.random.uniform(ks[8], (cexp,), jnp.float32, 0.5, 1.5),
        b3=0.1 * jax.random.normal(ks[9], (cexp,), jnp.float32),
        gs=jax.random.uniform(ks[10], (cexp,), jnp.float32, 0.5, 1.5),
        bs=0.1 * jax.random.normal(ks[11], (cexp,), jnp.float32),
    )


# --------------------------- pure-JAX reference ---------------------------- #

def _bn_train_ref(y, g, b):
    mean = jnp.mean(y, axis=(0, 1, 2), keepdims=True)
    var = jnp.mean(jnp.square(y - mean), axis=(0, 1, 2), keepdims=True)
    return (y - mean) * jax.lax.rsqrt(var + EPS) * g + b


def _conv_bf16(x, w, strides, padding):
    # matches the kernels: bf16 operands, f32 accumulation on the MXU
    return jax.lax.conv_general_dilated(
        x.astype(jnp.bfloat16), w.astype(jnp.bfloat16), strides, padding,
        dimension_numbers=("NHWC", "HWIO", "NHWC"),
        preferred_element_type=jnp.float32)


def reference_forward(x_nchw, params, stride):
    x = jnp.transpose(x_nchw, (0, 2, 3, 1)).astype(jnp.float32)
    _, _, _, cin = x.shape
    c = params["w1"].shape[1]
    cexp = params["w3"].shape[1]
    y = _conv_bf16(x, params["w1"].reshape(1, 1, cin, c), (1, 1), "VALID")
    y = jnp.maximum(_bn_train_ref(y, params["g1"], params["b1"]), 0.0)
    y = _conv_bf16(y, params["w2"], (stride, stride), ((1, 1), (1, 1)))
    y = jnp.maximum(_bn_train_ref(y, params["g2"], params["b2"]), 0.0)
    y = _conv_bf16(y, params["w3"].reshape(1, 1, c, cexp), (1, 1), "VALID")
    y = _bn_train_ref(y, params["g3"], params["b3"])
    if stride != 1 or cin != cexp:
        sc = _conv_bf16(x, params["ws"].reshape(1, 1, cin, cexp),
                        (stride, stride), "VALID")
        sc = _bn_train_ref(sc, params["gs"], params["bs"])
    else:
        sc = x
    out = jnp.maximum(y + sc, 0.0)
    return jnp.transpose(out, (0, 3, 1, 2))


# ---------------------------------- main ----------------------------------- #

if __name__ == "__main__":
    key = jax.random.PRNGKey(0)
    kx, kp, kx2, kp2 = jax.random.split(key, 4)

    # Case 1: projection shortcut (stride=2, in_channels != out_channels*4)
    N, Cin, H, W, C, stride = 2, 8, 16, 16, 4, 2
    x = jax.random.normal(kx, (N, Cin, H, W), jnp.float32)
    params = init_params(kp, Cin, C)
    out = jax.block_until_ready(bottleneck_forward(x, params, stride))
    assert out.shape == (N, 4 * C, H // stride, W // stride)
    ref = jax.block_until_ready(reference_forward(x, params, stride))
    np.testing.assert_allclose(np.asarray(out), np.asarray(ref),
                               rtol=1e-2, atol=1e-2)

    # Case 2: identity shortcut (stride=1, in_channels == out_channels*4)
    N2, Cin2, H2, W2, C2 = 2, 16, 8, 8, 4
    x2 = jax.random.normal(kx2, (N2, Cin2, H2, W2), jnp.float32)
    params2 = init_params(kp2, Cin2, C2)
    out2 = jax.block_until_ready(bottleneck_forward(x2, params2, 1))
    assert out2.shape == (N2, 4 * C2, H2, W2)
    ref2 = jax.block_until_ready(reference_forward(x2, params2, 1))
    np.testing.assert_allclose(np.asarray(out2), np.asarray(ref2),
                               rtol=1e-2, atol=1e-2)

    print("KERNEL_OK")
</pallas_src>

<mosaic_0001>
module attributes {stable_mosaic.version = 11 : i64} {
  func.func @_matmul_stats_kernel(%arg0: i32, %arg1: memref<512x8xf32, #tpu.memory_space<vmem>>, %arg2: memref<8x4xbf16, #tpu.memory_space<vmem>>, %arg3: memref<512x4xf32, #tpu.memory_space<vmem>>, %arg4: memref<1x4xf32, #tpu.memory_space<vmem>>, %arg5: memref<1x4xf32, #tpu.memory_space<vmem>>) attributes {dimension_semantics = [#tpu.dimension_semantics<arbitrary>], iteration_bounds = array<i64: 1>, scalar_prefetch = 0 : i64, scratch_operands = 0 : i64, tpu.core_type = #tpu.core_type<tc>, window_params = [{transform_indices = @transform_0, window_bounds = array<i64: 512, 8>}, {pipeline_mode = #tpu.pipeline_mode<synchronous>, transform_indices = @transform_1, window_bounds = array<i64: 8, 4>}, {transform_indices = @transform_2, window_bounds = array<i64: 512, 4>}, {pipeline_mode = #tpu.pipeline_mode<synchronous>, transform_indices = @transform_3, window_bounds = array<i64: 1, 4>}, {pipeline_mode = #tpu.pipeline_mode<synchronous>, transform_indices = @transform_4, window_bounds = array<i64: 1, 4>}]} {
    %c0_i32 = arith.constant 0 : i32
    %0 = arith.cmpi eq, %arg0, %c0_i32 : i32
    %1 = arith.extui %0 : i1 to i32
    %c0_i32_0 = arith.constant 0 : i32
    %2 = arith.cmpi ne, %1, %c0_i32_0 : i32
    scf.if %2 {
      %cst_16 = arith.constant 0.000000e+00 : f32
      %19 = vector.broadcast %cst_16 : f32 to vector<1x4xf32>
      %c0_17 = arith.constant 0 : index
      %c0_18 = arith.constant 0 : index
      %20 = vector.load %arg4[%c0_17, %c0_18] : memref<1x4xf32, #tpu.memory_space<vmem>>, vector<1x4xf32>
      tpu.vector_store %arg4[%c0_17, %c0_18], %19 {strides = array<i32>} : memref<1x4xf32, #tpu.memory_space<vmem>>, vector<1x4xf32>,
      %cst_19 = arith.constant 0.000000e+00 : f32
      %21 = vector.broadcast %cst_19 : f32 to vector<1x4xf32>
      %c0_20 = arith.constant 0 : index
      %c0_21 = arith.constant 0 : index
      %22 = vector.load %arg5[%c0_20, %c0_21] : memref<1x4xf32, #tpu.memory_space<vmem>>, vector<1x4xf32>
      tpu.vector_store %arg5[%c0_20, %c0_21], %21 {strides = array<i32>} : memref<1x4xf32, #tpu.memory_space<vmem>>, vector<1x4xf32>,
    } else {
    }
    %c0 = arith.constant 0 : index
    %c0_1 = arith.constant 0 : index
    %3 = vector.load %arg1[%c0, %c0_1] : memref<512x8xf32, #tpu.memory_space<vmem>>, vector<512x8xf32>
    %4 = arith.truncf %3 : vector<512x8xf32> to vector<512x8xbf16>
    %c0_2 = arith.constant 0 : index
    %c0_3 = arith.constant 0 : index
    %5 = vector.load %arg2[%c0_2, %c0_3] : memref<8x4xbf16, #tpu.memory_space<vmem>>, vector<8x4xbf16>
    %cst = arith.constant dense<0.000000e+00> : vector<512x4xf32>
    %6 = tpu.matmul %4, %5, %cst {dimension_numbers = #tpu.dot_dimension_numbers<[1], [0], [0], [1], [0, 0, 1, 1], [], []>} : vector<512x8xbf16>, vector<8x4xbf16>, vector<512x4xf32> -> vector<512x4xf32>
    %c0_4 = arith.constant 0 : index
    %c0_5 = arith.constant 0 : index
    %7 = vector.load %arg3[%c0_4, %c0_5] : memref<512x4xf32, #tpu.memory_space<vmem>>, vector<512x4xf32>
    tpu.vector_store %arg3[%c0_4, %c0_5], %6 {strides = array<i32>} : memref<512x4xf32, #tpu.memory_space<vmem>>, vector<512x4xf32>,
    %c0_6 = arith.constant 0 : index
    %c0_7 = arith.constant 0 : index
    %8 = vector.load %arg4[%c0_6, %c0_7] : memref<1x4xf32, #tpu.memory_space<vmem>>, vector<1x4xf32>
    %cst_8 = arith.constant dense<0.000000e+00> : vector<4xf32>
    %9 = vector.multi_reduction <add>, %6, %cst_8 [0] : vector<512x4xf32> to vector<4xf32>
    %10 = vector.shape_cast %9 : vector<4xf32> to vector<1x4xf32>
    %11 = arith.addf %8, %10 : vector<1x4xf32>
    %c0_9 = arith.constant 0 : index
    %c0_10 = arith.constant 0 : index
    %12 = vector.load %arg4[%c0_9, %c0_10] : memref<1x4xf32, #tpu.memory_space<vmem>>, vector<1x4xf32>
    tpu.vector_store %arg4[%c0_9, %c0_10], %11 {strides = array<i32>} : memref<1x4xf32, #tpu.memory_space<vmem>>, vector<1x4xf32>,
    %c0_11 = arith.constant 0 : index
    %c0_12 = arith.constant 0 : index
    %13 = vector.load %arg5[%c0_11, %c0_12] : memref<1x4xf32, #tpu.memory_space<vmem>>, vector<1x4xf32>
    %14 = arith.mulf %6, %6 : vector<512x4xf32>
    %cst_13 = arith.constant dense<0.000000e+00> : vector<4xf32>
    %15 = vector.multi_reduction <add>, %14, %cst_13 [0] : vector<512x4xf32> to vector<4xf32>
    %16 = vector.shape_cast %15 : vector<4xf32> to vector<1x4xf32>
    %17 = arith.addf %13, %16 : vector<1x4xf32>
    %c0_14 = arith.constant 0 : index
    %c0_15 = arith.constant 0 : index
    %18 = vector.load %arg5[%c0_14, %c0_15] : memref<1x4xf32, #tpu.memory_space<vmem>>, vector<1x4xf32>
    tpu.vector_store %arg5[%c0_14, %c0_15], %17 {strides = array<i32>} : memref<1x4xf32, #tpu.memory_space<vmem>>, vector<1x4xf32>,
    return
  }
  func.func @transform_0(%arg0: i32) -> (i32, i32) {
    %c0_i32 = arith.constant 0 : i32
    %c0_i32_0 = arith.constant 0 : i32
    return %arg0, %c0_i32 : i32, i32
  }
  func.func @transform_1(%arg0: i32) -> (i32, i32) {
    %c0_i32 = arith.constant 0 : i32
    %c0_i32_0 = arith.constant 0 : i32
    %c0_i32_1 = arith.constant 0 : i32
    return %c0_i32, %c0_i32_0 : i32, i32
  }
  func.func @transform_2(%arg0: i32) -> (i32, i32) {
    %c0_i32 = arith.constant 0 : i32
    %c0_i32_0 = arith.constant 0 : i32
    return %arg0, %c0_i32 : i32, i32
  }
  func.func @transform_3(%arg0: i32) -> (i32, i32) {
    %c0_i32 = arith.constant 0 : i32
    %c0_i32_0 = arith.constant 0 : i32
    %c0_i32_1 = arith.constant 0 : i32
    return %c0_i32, %c0_i32_0 : i32, i32
  }
  func.func @transform_4(%arg0: i32) -> (i32, i32) {
    %c0_i32 = arith.constant 0 : i32
    %c0_i32_0 = arith.constant 0 : i32
    %c0_i32_1 = arith.constant 0 : i32
    return %c0_i32, %c0_i32_0 : i32, i32
  }
}

</mosaic_0001>

<bundles_post_ra>
// kernel: tpu_custom_call.1
= control target key start
LH: loop header
LB: loop body
LE: loop exit
PB: predicated region body
PF: predicated region fallthrough
CT: control target
= control target key end

     0   :  { %10 = vsyncpa [#allocation3], 0  ;;  %vm218_vm0 = vcmask 1043456   ;;  %vm121_vm1 = vcmask 64512   ;;  %s1862_s0 = inlined_call_operand.vmem [shape: f32[512,8], index: 0, kind: input, shape index: {}]   ;;  %s1863_s1 = inlined_call_operand.vmem [shape: bf16[8,4], index: 1, kind: input, shape index: {}]   ;;  %s1864_s2 = inlined_call_operand.vmem [shape: f32[512,4], index: 2, kind: output, shape index: {0}]   ;;  %s1865_s3 = inlined_call_operand.hbm [shape: f32[1,4], index: 3, kind: output, shape index: {1}]   ;;  %s1866_s4 = inlined_call_operand.hbm [shape: f32[1,4], index: 4, kind: output, shape index: {2}]  }
   0x1   :  { %v120_v0 = vld [vmem:[%s1863_s1] sm:$0xf]  ;;  %v25_v2 = vld [vmem:[%s1862_s0 + $0x8] sm:$0xff] }
   0x2   :  { %v24_v1 = vld [vmem:[%s1862_s0] sm:$0xff]  ;;  %v220_v3 = vsel %vm218_vm0, %v120_v0, 0  ;;  %v41_v6 = vld [vmem:[%s1862_s0 + $0x88] sm:$0xff] }
   0x3   :  { %v88_v4 = vpack.c.bf16 %v25_v2, %v24_v1  ;;  %v40_v5 = vld [vmem:[%s1862_s0 + $0x80] sm:$0xff]  ;;  %229 = vmatpush.bf16.msra.mxu0 %v220_v3  ;;  %861 = vmatpush.bf16.msra.mxu1 %v220_v3 }
   0x4   :  { %v96_v7 = vpack.c.bf16 %v41_v6, %v40_v5  ;;  %862 = vmatpush.bf16.msra.mxu2 %v220_v3  ;;  %863 = vmatpush.bf16.msra.mxu3 %v220_v3 }
   0x5   :  { %11 = vsyncpa [#allocation5], 0  ;;  %v26_v8 = vld [vmem:[%s1862_s0 + $0x10] sm:$0xff]  ;;  %v27_v9 = vld [vmem:[%s1862_s0 + $0x18] sm:$0xff]  ;;  %vm391_vm2 = vcmask 31744   ;;  %vm21_vm3 = vcmask 24576  }
   0x6   :  { %829 = vmatmul.msk.bf16.vlgmr.msra.gmra.mxu0 %vm121_vm1, %v88_v4  ;;  %837 = vmatmul.msk.bf16.vlgmr.msra.gmra.mxu1 %vm121_vm1, %v96_v7  ;;  %v42_v10 = vld [vmem:[%s1862_s0 + $0x90] sm:$0xff]  ;;  %v43_v11 = vld [vmem:[%s1862_s0 + $0x98] sm:$0xff]  ;;  %v89_v12 = vpack.c.bf16 %v27_v9, %v26_v8  ;;  %v56_v14 = vld [vmem:[%s1862_s0 + $0x100] sm:$0xff]  ;;  %s802_s28 = sshll.u32 %s1865_s3, 4  ;;  %s921_s29 = smov [#allocation4]   ;;  %s803_s28 = int_to_ptr.hbm [resolvable:$true] %s802_s28 }
   0x7   :  { %v97_v13 = vpack.c.bf16 %v43_v11, %v42_v10  ;;  %v57_v15 = vld [vmem:[%s1862_s0 + $0x108] sm:$0xff]  ;;  %v28_v17 = vld [vmem:[%s1862_s0 + $0x20] sm:$0xff]  ;;  %v58_v23 = vld [vmem:[%s1862_s0 + $0x110] sm:$0xff]  ;;  %s811_s30 = sshll.u32 %s921_s29, 4  ;;  %s813_s7 = sshll.u32 %s1866_s4, 4  ;;  %s812_s30 = int_to_ptr.vmem [resolvable:$true] %s811_s30  ;;  %s814_s7 = int_to_ptr.hbm [resolvable:$true] %s813_s7 }
   0x8   :  { %v104_v16 = vpack.c.bf16 %v57_v15, %v56_v14  ;;  %v29_v18 = vld [vmem:[%s1862_s0 + $0x28] sm:$0xff]  ;;  %v44_v19 = vld [vmem:[%s1862_s0 + $0xa0] sm:$0xff]  ;;  %v59_v24 = vld [vmem:[%s1862_s0 + $0x118] sm:$0xff] }
   0x9   :  { %v45_v20 = vld [vmem:[%s1862_s0 + $0xa8] sm:$0xff]  ;;  %v90_v21 = vpack.c.bf16 %v29_v18, %v28_v17  ;;  %v105_v25 = vpack.c.bf16 %v59_v24, %v58_v23  ;;  %v30_v26 = vld [vmem:[%s1862_s0 + $0x30] sm:$0xff]  ;;  %v31_v27 = vld [vmem:[%s1862_s0 + $0x38] sm:$0xff] }
   0xa   :  { %845 = vmatmul.msk.bf16.vlgmr.msra.gmra.mxu2 %vm121_vm1, %v104_v16  ;;  %v98_v22 = vpack.c.bf16 %v45_v20, %v44_v19  ;;  %v46_v28 = vld [vmem:[%s1862_s0 + $0xb0] sm:$0xff]  ;;  %v47_v29 = vld [vmem:[%s1862_s0 + $0xb8] sm:$0xff]  ;;  %v91_v30 = vpack.c.bf16 %v31_v27, %v30_v26  ;;  %v60_v32 = vld [vmem:[%s1862_s0 + $0x120] sm:$0xff] }
   0xb   :  { %v99_v31 = vpack.c.bf16 %v47_v29, %v46_v28  ;;  %v61_v33 = vld [vmem:[%s1862_s0 + $0x128] sm:$0xff]  ;;  %v72_v34 = vld [vmem:[%s1862_s0 + $0x180] sm:$0xff]  ;;  %v62_v44 = vld [vmem:[%s1862_s0 + $0x130] sm:$0xff] }
   0xc   :  { %v106_v35 = vpack.c.bf16 %v61_v33, %v60_v32  ;;  %v73_v36 = vld [vmem:[%s1862_s0 + $0x188] sm:$0xff]  ;;  %v32_v38 = vld [vmem:[%s1862_s0 + $0x40] sm:$0xff]  ;;  %v63_v45 = vld [vmem:[%s1862_s0 + $0x138] sm:$0xff] }
   0xd   :  { %v112_v37 = vpack.c.bf16 %v73_v36, %v72_v34  ;;  %v33_v39 = vld [vmem:[%s1862_s0 + $0x48] sm:$0xff]  ;;  %v48_v40 = vld [vmem:[%s1862_s0 + $0xc0] sm:$0xff]  ;;  %v74_v46 = vld [vmem:[%s1862_s0 + $0x190] sm:$0xff]  ;;  %v107_v47 = vpack.c.bf16 %v63_v45, %v62_v44 }
   0xe   :  { %v49_v41 = vld [vmem:[%s1862_s0 + $0xc8] sm:$0xff]  ;;  %v92_v42 = vpack.c.bf16 %v33_v39, %v32_v38  ;;  %v75_v48 = vld [vmem:[%s1862_s0 + $0x198] sm:$0xff]  ;;  %v34_v50 = vld [vmem:[%s1862_s0 + $0x50] sm:$0xff] }
   0xf   :  { %853 = vmatmul.msk.bf16.vlgmr.msra.gmra.mxu3 %vm121_vm1, %v112_v37  ;;  %v100_v43 = vpack.c.bf16 %v49_v41, %v48_v40  ;;  %v113_v49 = vpack.c.bf16 %v75_v48, %v74_v46  ;;  %v35_v51 = vld [vmem:[%s1862_s0 + $0x58] sm:$0xff]  ;;  %v50_v52 = vld [vmem:[%s1862_s0 + $0xd0] sm:$0xff]  ;;  %v64_v56 = vld [vmem:[%s1862_s0 + $0x140] sm:$0xff] }
  0x10   :  { %v51_v53 = vld [vmem:[%s1862_s0 + $0xd8] sm:$0xff]  ;;  %v93_v54 = vpack.c.bf16 %v35_v51, %v34_v50  ;;  %v65_v57 = vld [vmem:[%s1862_s0 + $0x148] sm:$0xff]  ;;  %v76_v58 = vld [vmem:[%s1862_s0 + $0x1a0] sm:$0xff] }
  0x11   :  { %v101_v55 = vpack.c.bf16 %v51_v53, %v50_v52  ;;  %v108_v59 = vpack.c.bf16 %v65_v57, %v64_v56  ;;  %v77_v60 = vld [vmem:[%s1862_s0 + $0x1a8] sm:$0xff]  ;;  %v36_v62 = vld [vmem:[%s1862_s0 + $0x60] sm:$0xff]  ;;  %v66_v4 = vld [vmem:[%s1862_s0 + $0x150] sm:$0xff] }
  0x12   :  { %v114_v61 = vpack.c.bf16 %v77_v60, %v76_v58  ;;  %v37_v63 = vld [vmem:[%s1862_s0 + $0x68] sm:$0xff]  ;;  %v52_v0 = vld [vmem:[%s1862_s0 + $0xe0] sm:$0xff]  ;;  %v67_v5 = vld [vmem:[%s1862_s0 + $0x158] sm:$0xff] }
  0x13   :  { %v53_v1 = vld [vmem:[%s1862_s0 + $0xe8] sm:$0xff]  ;;  %v94_v2 = vpack.c.bf16 %v37_v63, %v36_v62  ;;  %v78_v6 = vld [vmem:[%s1862_s0 + $0x1b0] sm:$0xff]  ;;  %v109_v7 = vpack.c.bf16 %v67_v5, %v66_v4  ;;  %v79_v8 = vld [vmem:[%s1862_s0 + $0x1b8] sm:$0xff] }
  0x14   :  { %v102_v3 = vpack.c.bf16 %v53_v1, %v52_v0  ;;  %v115_v9 = vpack.c.bf16 %v79_v8, %v78_v6  ;;  %v38_v10 = vld [vmem:[%s1862_s0 + $0x70] sm:$0xff]  ;;  %v39_v11 = vld [vmem:[%s1862_s0 + $0x78] sm:$0xff]  ;;  %v68_v16 = vld [vmem:[%s1862_s0 + $0x160] sm:$0xff] }
  0x15   :  { %v95_v14 = vpack.c.bf16 %v39_v11, %v38_v10  ;;  %v69_v17 = vld [vmem:[%s1862_s0 + $0x168] sm:$0xff]  ;;  %v80_v18 = vld [vmem:[%s1862_s0 + $0x1c0] sm:$0xff]  ;;  %v70_v24 = vld [vmem:[%s1862_s0 + $0x170] sm:$0xff] }
  0x16   :  { %830 = vmatmul.msk.bf16.gmra.mxu0 %vm121_vm1, %v89_v12  ;;  %838 = vmatmul.msk.bf16.gmra.mxu1 %vm121_vm1, %v97_v13  ;;  %v54_v12 = vld [vmem:[%s1862_s0 + $0xf0] sm:$0xff]  ;;  %v55_v13 = vld [vmem:[%s1862_s0 + $0xf8] sm:$0xff]  ;;  %v110_v19 = vpack.c.bf16 %v69_v17, %v68_v16  ;;  %v81_v20 = vld [vmem:[%s1862_s0 + $0x1c8] sm:$0xff] }
  0x17   :  { %v103_v15 = vpack.c.bf16 %v55_v13, %v54_v12  ;;  %v82_v26 = vld [vmem:[%s1862_s0 + $0x1d0] sm:$0xff]  ;;  %v83_v28 = vld [vmem:[%s1862_s0 + $0x1d8] sm:$0xff]  ;;  %v84_v45 = vld [vmem:[%s1862_s0 + $0x1e0] sm:$0xff] }
  0x18   :  { %v117_v29 = vpack.c.bf16 %v83_v28, %v82_v26  ;;  %v85_v46 = vld [vmem:[%s1862_s0 + $0x1e8] sm:$0xff]  ;;  %v86_v0 = vld [vmem:[%s1862_s0 + $0x1f0] sm:$0xff]  ;;  %v87_v1 = vld [vmem:[%s1862_s0 + $0x1f8] sm:$0xff] }
  0x19   :  { %v118_v48 = vpack.c.bf16 %v85_v46, %v84_v45 }
  0x1a   :  { %846 = vmatmul.msk.bf16.gmra.mxu2 %vm121_vm1, %v105_v25  ;;  %v71_v25 = vld [vmem:[%s1862_s0 + $0x178] sm:$0xff] }
  0x1b   :  { %v111_v27 = vpack.c.bf16 %v71_v25, %v70_v24 }
  0x1f   :  { %854 = vmatmul.msk.bf16.gmra.mxu3 %vm121_vm1, %v113_v49 }
  0x26   :  { %831 = vmatmul.msk.bf16.gmra.mxu0 %vm121_vm1, %v90_v21  ;;  %839 = vmatmul.msk.bf16.gmra.mxu1 %vm121_vm1, %v98_v22  ;;  %v116_v21 = vpack.c.bf16 %v81_v20, %v80_v18 }
  0x2a   :  { %847 = vmatmul.msk.bf16.gmra.mxu2 %vm121_vm1, %v106_v35 }
  0x2f   :  { %855 = vmatmul.msk.bf16.gmra.mxu3 %vm121_vm1, %v114_v61 }
  0x36   :  { %832 = vmatmul.msk.bf16.gmra.mxu0 %vm121_vm1, %v91_v30  ;;  %840 = vmatmul.msk.bf16.gmra.mxu1 %vm121_vm1, %v99_v31 }
  0x3a   :  { %848 = vmatmul.msk.bf16.gmra.mxu2 %vm121_vm1, %v107_v47 }
  0x3f   :  { %856 = vmatmul.msk.bf16.gmra.mxu3 %vm121_vm1, %v115_v9 }
  0x46   :  { %833 = vmatmul.msk.bf16.gmra.mxu0 %vm121_vm1, %v92_v42  ;;  %841 = vmatmul.msk.bf16.gmra.mxu1 %vm121_vm1, %v100_v43 }
  0x4a   :  { %849 = vmatmul.msk.bf16.gmra.mxu2 %vm121_vm1, %v108_v59 }
  0x4f   :  { %857 = vmatmul.msk.bf16.gmra.mxu3 %vm121_vm1, %v116_v21 }
  0x56   :  { %834 = vmatmul.msk.bf16.gmra.mxu0 %vm121_vm1, %v93_v54  ;;  %842 = vmatmul.msk.bf16.gmra.mxu1 %vm121_vm1, %v101_v55 }
  0x5a   :  { %850 = vmatmul.msk.bf16.gmra.mxu2 %vm121_vm1, %v109_v7 }
  0x5f   :  { %858 = vmatmul.msk.bf16.gmra.mxu3 %vm121_vm1, %v117_v29 }
  0x66   :  { %835 = vmatmul.msk.bf16.gmra.mxu0 %vm121_vm1, %v94_v2  ;;  %843 = vmatmul.msk.bf16.gmra.mxu1 %vm121_vm1, %v102_v3  ;;  %v119_v3 = vpack.c.bf16 %v87_v1, %v86_v0 }
  0x6a   :  { %851 = vmatmul.msk.bf16.gmra.mxu2 %vm121_vm1, %v110_v19 }
  0x6f   :  { %859 = vmatmul.msk.bf16.gmra.mxu3 %vm121_vm1, %v118_v48 }
  0x76   :  { %836 = vmatmul.msk.bf16.gmra.mxu0 %vm121_vm1, %v95_v14  ;;  %844 = vmatmul.msk.bf16.gmra.mxu1 %vm121_vm1, %v103_v15 }
  0x7a   :  { %852 = vmatmul.msk.bf16.gmra.mxu2 %vm121_vm1, %v111_v27 }
  0x7f   :  { %860 = vmatmul.msk.bf16.gmra.mxu3 %vm121_vm1, %v119_v3 }
  0x83   :  { %v231_v22 = vpop.f32.mrf.mxu0  ;;  %v1146_v23 = vpop.f32.mrf.mxu1 }
  0x84   :  { %392 = vst.msk [vmem:[%s1864_s2] sm:$0xff] %vm391_vm2, %v231_v22  ;;  %v594_v30 = vmul.f32 %v231_v22, %v231_v22  ;;  %v457_v33 = vsel %vm391_vm2, %v231_v22, 0.0 }
  0x85   :  { %408 = vst.msk [vmem:[%s1864_s2 + $0x80] sm:$0xff] %vm391_vm2, %v1146_v23 }
  0x86   :  { %v658_v37 = vsel %vm391_vm2, %v594_v30, 0.0 }
  0x8b   :  { %v233_v31 = vpop.f32.mrf.mxu0  ;;  %v1171_v32 = vpop.f32.mrf.mxu1 }
  0x8c   :  { %393 = vst.msk [vmem:[%s1864_s2 + $0x8] sm:$0xff] %vm391_vm2, %v233_v31  ;;  %v458_v34 = vsel %vm391_vm2, %v233_v31, 0.0  ;;  %v595_v35 = vmul.f32 %v233_v31, %v233_v31 }
  0x8d   :  { %v459_v36 = vadd.f32 %v458_v34, %v457_v33  ;;  %409 = vst.msk [vmem:[%s1864_s2 + $0x88] sm:$0xff] %vm391_vm2, %v1171_v32  ;;  %v1213_v54 = vpop.f32.mrf.mxu2 }
  0x8e   :  { %v659_v38 = vsel %vm391_vm2, %v595_v35, 0.0  ;;  %424 = vst.msk [vmem:[%s1864_s2 + $0x100] sm:$0xff] %vm391_vm2, %v1213_v54 }
  0x8f   :  { %v660_v39 = vadd.f32 %v659_v38, %v658_v37 }
  0x92   :  { %v1301_v14 = vpop.f32.mrf.mxu3 }
  0x93   :  { %v236_v40 = vpop.f32.mrf.mxu0  ;;  %v1186_v41 = vpop.f32.mrf.mxu1  ;;  %440 = vst.msk [vmem:[%s1864_s2 + $0x180] sm:$0xff] %vm391_vm2, %v1301_v14 }
  0x94   :  { %394 = vst.msk [vmem:[%s1864_s2 + $0x10] sm:$0xff] %vm391_vm2, %v236_v40  ;;  %v460_v42 = vsel %vm391_vm2, %v236_v40, 0.0  ;;  %v596_v43 = vmul.f32 %v236_v40, %v236_v40 }
  0x95   :  { %v461_v44 = vadd.f32 %v460_v42, %v459_v36  ;;  %410 = vst.msk [vmem:[%s1864_s2 + $0x90] sm:$0xff] %vm391_vm2, %v1186_v41  ;;  %v1233_v62 = vpop.f32.mrf.mxu2 }
  0x96   :  { %v661_v47 = vsel %vm391_vm2, %v596_v43, 0.0  ;;  %425 = vst.msk [vmem:[%s1864_s2 + $0x108] sm:$0xff] %vm391_vm2, %v1233_v62 }
  0x97   :  { %v662_v49 = vadd.f32 %v661_v47, %v660_v39 }
  0x9a   :  { %v1326_v18 = vpop.f32.mrf.mxu3 }
  0x9b   :  { %v238_v50 = vpop.f32.mrf.mxu0  ;;  %v1206_v51 = vpop.f32.mrf.mxu1  ;;  %441 = vst.msk [vmem:[%s1864_s2 + $0x188] sm:$0xff] %vm391_vm2, %v1326_v18 }
  0x9c   :  { %395 = vst.msk [vmem:[%s1864_s2 + $0x18] sm:$0xff] %vm391_vm2, %v238_v50  ;;  %v462_v52 = vsel %vm391_vm2, %v238_v50, 0.0  ;;  %v597_v53 = vmul.f32 %v238_v50, %v238_v50 }
  0x9d   :  { %v463_v55 = vadd.f32 %v462_v52, %v461_v44  ;;  %411 = vst.msk [vmem:[%s1864_s2 + $0x98] sm:$0xff] %vm391_vm2, %v1206_v51  ;;  %v1263_v7 = vpop.f32.mrf.mxu2 }
  0x9e   :  { %v663_v56 = vsel %vm391_vm2, %v597_v53, 0.0  ;;  %426 = vst.msk [vmem:[%s1864_s2 + $0x110] sm:$0xff] %vm391_vm2, %v1263_v7 }
  0x9f   :  { %v664_v57 = vadd.f32 %v663_v56, %v662_v49 }
  0xa2   :  { %v1351_v22 = vpop.f32.mrf.mxu3 }
  0xa3   :  { %v241_v58 = vpop.f32.mrf.mxu0  ;;  %v1226_v59 = vpop.f32.mrf.mxu1  ;;  %442 = vst.msk [vmem:[%s1864_s2 + $0x190] sm:$0xff] %vm391_vm2, %v1351_v22 }
  0xa4   :  { %396 = vst.msk [vmem:[%s1864_s2 + $0x20] sm:$0xff] %vm391_vm2, %v241_v58  ;;  %v464_v60 = vsel %vm391_vm2, %v241_v58, 0.0  ;;  %v598_v61 = vmul.f32 %v241_v58, %v241_v58 }
  0xa5   :  { %v1235_v63 = vadd.f32 %v464_v60, %v463_v55  ;;  %412 = vst.msk [vmem:[%s1864_s2 + $0xa0] sm:$0xff] %vm391_vm2, %v1226_v59  ;;  %v1281_v10 = vpop.f32.mrf.mxu2 }
  0xa6   :  { %v665_v2 = vsel %vm391_vm2, %v598_v61, 0.0  ;;  %427 = vst.msk [vmem:[%s1864_s2 + $0x118] sm:$0xff] %vm391_vm2, %v1281_v10 }
  0xa7   :  { %v1254_v4 = vadd.f32 %v665_v2, %v664_v57 }
  0xaa   :  { %v1376_v27 = vpop.f32.mrf.mxu3 }
  0xab   :  { %v243_v5 = vpop.f32.mrf.mxu0  ;;  %v1257_v6 = vpop.f32.mrf.mxu1  ;;  %443 = vst.msk [vmem:[%s1864_s2 + $0x198] sm:$0xff] %vm391_vm2, %v1376_v27 }
  0xac   :  { %397 = vst.msk [vmem:[%s1864_s2 + $0x28] sm:$0xff] %vm391_vm2, %v243_v5  ;;  %v599_v35 = vmul.f32 %v243_v5, %v243_v5  ;;  %v466_v38 = vsel %vm391_vm2, %v243_v5, 0.0 }
  0xad   :  { %413 = vst.msk [vmem:[%s1864_s2 + $0xa8] sm:$0xff] %vm391_vm2, %v1257_v6  ;;  %v1299_v13 = vpop.f32.mrf.mxu2  ;;  %v467_v44 = vadd.f32 %v466_v38, %v1235_v63 }
  0xae   :  { %428 = vst.msk [vmem:[%s1864_s2 + $0x120] sm:$0xff] %vm391_vm2, %v1299_v13  ;;  %v667_v40 = vsel %vm391_vm2, %v599_v35, 0.0 }
  0xaf   :  { %v668_v48 = vadd.f32 %v667_v40, %v1254_v4 }
  0xb2   :  { %v1401_v31 = vpop.f32.mrf.mxu3 }
  0xb3   :  { %v246_v8 = vpop.f32.mrf.mxu0  ;;  %v1275_v9 = vpop.f32.mrf.mxu1  ;;  %444 = vst.msk [vmem:[%s1864_s2 + $0x1a0] sm:$0xff] %vm391_vm2, %v1401_v31 }
  0xb4   :  { %398 = vst.msk [vmem:[%s1864_s2 + $0x30] sm:$0xff] %vm391_vm2, %v246_v8  ;;  %v600_v39 = vmul.f32 %v246_v8, %v246_v8  ;;  %v468_v42 = vsel %vm391_vm2, %v246_v8, 0.0 }
  0xb5   :  { %414 = vst.msk [vmem:[%s1864_s2 + $0xb0] sm:$0xff] %vm391_vm2, %v1275_v9  ;;  %v1324_v17 = vpop.f32.mrf.mxu2  ;;  %v469_v49 = vadd.f32 %v468_v42, %v467_v44 }
  0xb6   :  { %429 = vst.msk [vmem:[%s1864_s2 + $0x128] sm:$0xff] %vm391_vm2, %v1324_v17  ;;  %v669_v45 = vsel %vm391_vm2, %v600_v39, 0.0 }
  0xb7   :  { %v670_v60 = vadd.f32 %v669_v45, %v668_v48 }
  0xba   :  { %v1426_v37 = vpop.f32.mrf.mxu3 }
  0xbb   :  { %v248_v11 = vpop.f32.mrf.mxu0  ;;  %v1293_v12 = vpop.f32.mrf.mxu1  ;;  %445 = vst.msk [vmem:[%s1864_s2 + $0x1a8] sm:$0xff] %vm391_vm2, %v1426_v37 }
  0xbc   :  { %399 = vst.msk [vmem:[%s1864_s2 + $0x38] sm:$0xff] %vm391_vm2, %v248_v11  ;;  %v601_v43 = vmul.f32 %v248_v11, %v248_v11  ;;  %v470_v46 = vsel %vm391_vm2, %v248_v11, 0.0 }
  0xbd   :  { %415 = vst.msk [vmem:[%s1864_s2 + $0xb8] sm:$0xff] %vm391_vm2, %v1293_v12  ;;  %v1349_v21 = vpop.f32.mrf.mxu2  ;;  %v471_v61 = vadd.f32 %v470_v46, %v469_v49 }
  0xbe   :  { %430 = vst.msk [vmem:[%s1864_s2 + $0x130] sm:$0xff] %vm391_vm2, %v1349_v21  ;;  %v671_v53 = vsel %vm391_vm2, %v601_v43, 0.0 }
  0xbf   :  { %v672_v2 = vadd.f32 %v671_v53, %v670_v60 }
  0xc2   :  { %v1460_v58 = vpop.f32.mrf.mxu3 }
  0xc3   :  { %v251_v15 = vpop.f32.mrf.mxu0  ;;  %v1318_v16 = vpop.f32.mrf.mxu1  ;;  %446 = vst.msk [vmem:[%s1864_s2 + $0x1b0] sm:$0xff] %vm391_vm2, %v1460_v58 }
  0xc4   :  { %400 = vst.msk [vmem:[%s1864_s2 + $0x40] sm:$0xff] %vm391_vm2, %v251_v15  ;;  %v602_v47 = vmul.f32 %v251_v15, %v251_v15  ;;  %v472_v55 = vsel %vm391_vm2, %v251_v15, 0.0 }
  0xc5   :  { %416 = vst.msk [vmem:[%s1864_s2 + $0xc0] sm:$0xff] %vm391_vm2, %v1318_v16  ;;  %v1374_v26 = vpop.f32.mrf.mxu2  ;;  %v473_v3 = vadd.f32 %v472_v55, %v471_v61 }
  0xc6   :  { %431 = vst.msk [vmem:[%s1864_s2 + $0x138] sm:$0xff] %vm391_vm2, %v1374_v26  ;;  %v673_v63 = vsel %vm391_vm2, %v602_v47, 0.0 }
  0xc7   :  { %v674_v11 = vadd.f32 %v673_v63, %v672_v2 }
  0xca   :  { %v1493_v47 = vpop.f32.mrf.mxu3 }
  0xcb   :  { %v253_v19 = vpop.f32.mrf.mxu0  ;;  %v1343_v20 = vpop.f32.mrf.mxu1  ;;  %447 = vst.msk [vmem:[%s1864_s2 + $0x1b8] sm:$0xff] %vm391_vm2, %v1493_v47 }
  0xcc   :  { %401 = vst.msk [vmem:[%s1864_s2 + $0x48] sm:$0xff] %vm391_vm2, %v253_v19  ;;  %v603_v56 = vmul.f32 %v253_v19, %v253_v19  ;;  %v474_v0 = vsel %vm391_vm2, %v253_v19, 0.0 }
  0xcd   :  { %417 = vst.msk [vmem:[%s1864_s2 + $0xc8] sm:$0xff] %vm391_vm2, %v1343_v20  ;;  %v1399_v30 = vpop.f32.mrf.mxu2  ;;  %v475_v15 = vadd.f32 %v474_v0, %v473_v3 }
  0xce   :  { %432 = vst.msk [vmem:[%s1864_s2 + $0x140] sm:$0xff] %vm391_vm2, %v1399_v30  ;;  %v675_v4 = vsel %vm391_vm2, %v603_v56, 0.0 }
  0xcf   :  { %v676_v39 = vadd.f32 %v675_v4, %v674_v11 }
  0xd3   :  { %v256_v24 = vpop.f32.mrf.mxu0  ;;  %v1368_v25 = vpop.f32.mrf.mxu1 }
  0xd4   :  { %402 = vst.msk [vmem:[%s1864_s2 + $0x50] sm:$0xff] %vm391_vm2, %v256_v24  ;;  %v604_v1 = vmul.f32 %v256_v24, %v256_v24  ;;  %v476_v5 = vsel %vm391_vm2, %v256_v24, 0.0 }
  0xd5   :  { %418 = vst.msk [vmem:[%s1864_s2 + $0xd0] sm:$0xff] %vm391_vm2, %v1368_v25  ;;  %v1424_v36 = vpop.f32.mrf.mxu2  ;;  %v477_v40 = vadd.f32 %v476_v5, %v475_v15  ;;  %v610_v5 = vmul.f32 %v1146_v23, %v1146_v23 }
  0xd6   :  { %433 = vst.msk [vmem:[%s1864_s2 + $0x148] sm:$0xff] %vm391_vm2, %v1424_v36  ;;  %v677_v19 = vsel %vm391_vm2, %v604_v1, 0.0 }
  0xdb   :  { %v258_v28 = vpop.f32.mrf.mxu0  ;;  %v1393_v29 = vpop.f32.mrf.mxu1 }
  0xdc   :  { %403 = vst.msk [vmem:[%s1864_s2 + $0x58] sm:$0xff] %vm391_vm2, %v258_v28  ;;  %v605_v8 = vmul.f32 %v258_v28, %v258_v28  ;;  %v478_v35 = vsel %vm391_vm2, %v258_v28, 0.0  ;;  %v678_v28 = vadd.f32 %v677_v19, %v676_v39  ;;  %v1526_v19 = vpop.f32.mrf.mxu3  ;;  %v488_v39 = vsel %vm391_vm2, %v1146_v23, 0.0 }
  0xdd   :  { %419 = vst.msk [vmem:[%s1864_s2 + $0xd8] sm:$0xff] %vm391_vm2, %v1393_v29  ;;  %v1458_v57 = vpop.f32.mrf.mxu2  ;;  %v479_v48 = vadd.f32 %v478_v35, %v477_v40  ;;  %v611_v40 = vmul.f32 %v1171_v32, %v1171_v32  ;;  %v689_v23 = vsel %vm391_vm2, %v610_v5, 0.0 }
  0xde   :  { %434 = vst.msk [vmem:[%s1864_s2 + $0x150] sm:$0xff] %vm391_vm2, %v1458_v57  ;;  %v679_v44 = vsel %vm391_vm2, %v605_v8, 0.0 }
  0xdf   :  { %v680_v55 = vadd.f32 %v679_v44, %v678_v28  ;;  %448 = vst.msk [vmem:[%s1864_s2 + $0x1c0] sm:$0xff] %vm391_vm2, %v1526_v19  ;;  %v612_v28 = vmul.f32 %v1186_v41, %v1186_v41 }
  0xe3   :  { %v261_v33 = vpop.f32.mrf.mxu0  ;;  %v1418_v34 = vpop.f32.mrf.mxu1 }
  0xe4   :  { %404 = vst.msk [vmem:[%s1864_s2 + $0x60] sm:$0xff] %vm391_vm2, %v261_v33  ;;  %v606_v38 = vmul.f32 %v261_v33, %v261_v33  ;;  %v480_v45 = vsel %vm391_vm2, %v261_v33, 0.0 }
  0xe5   :  { %420 = vst.msk [vmem:[%s1864_s2 + $0xe0] sm:$0xff] %vm391_vm2, %v1418_v34  ;;  %v1491_v24 = vpop.f32.mrf.mxu2  ;;  %v481_v56 = vadd.f32 %v480_v45, %v479_v48 }
  0xe6   :  { %v681_v33 = vsel %vm391_vm2, %v606_v38, 0.0  ;;  %435 = vst.msk [vmem:[%s1864_s2 + $0x158] sm:$0xff] %vm391_vm2, %v1491_v24 }
  0xeb   :  { %v263_v50 = vpop.f32.mrf.mxu0  ;;  %v1450_v52 = vpop.f32.mrf.mxu1 }
  0xec   :  { %405 = vst.msk [vmem:[%s1864_s2 + $0x68] sm:$0xff] %vm391_vm2, %v263_v50  ;;  %v607_v46 = vmul.f32 %v263_v50, %v263_v50  ;;  %v482_v49 = vsel %vm391_vm2, %v263_v50, 0.0  ;;  %v682_v50 = vadd.f32 %v681_v33, %v680_v55  ;;  %v613_v55 = vmul.f32 %v1206_v51, %v1206_v51 }
  0xed   :  { %421 = vst.msk [vmem:[%s1864_s2 + $0xe8] sm:$0xff] %vm391_vm2, %v1450_v52  ;;  %v483_v63 = vadd.f32 %v482_v49, %v481_v56  ;;  %v1524_v15 = vpop.f32.mrf.mxu2  ;;  %v691_v49 = vsel %vm391_vm2, %v611_v40, 0.0 }
  0xee   :  { %v683_v60 = vsel %vm391_vm2, %v607_v46, 0.0  ;;  %436 = vst.msk [vmem:[%s1864_s2 + $0x160] sm:$0xff] %vm391_vm2, %v1524_v15  ;;  %v490_v46 = vsel %vm391_vm2, %v1171_v32, 0.0  ;;  %v494_v32 = vsel %vm391_vm2, %v1206_v51, 0.0  ;;  %v496_v51 = vsel %vm391_vm2, %v1226_v59, 0.0 }
  0xef   :  { %v684_v1 = vadd.f32 %v683_v60, %v682_v50  ;;  %v614_v50 = vmul.f32 %v1226_v59, %v1226_v59 }
  0xf3   :  { %v266_v42 = vpop.f32.mrf.mxu0  ;;  %v1483_v43 = vpop.f32.mrf.mxu1 }
  0xf4   :  { %406 = vst.msk [vmem:[%s1864_s2 + $0x70] sm:$0xff] %vm391_vm2, %v266_v42  ;;  %v608_v53 = vmul.f32 %v266_v42, %v266_v42  ;;  %v484_v61 = vsel %vm391_vm2, %v266_v42, 0.0 }
  0xf5   :  { %422 = vst.msk [vmem:[%s1864_s2 + $0xf0] sm:$0xff] %vm391_vm2, %v1483_v43  ;;  %v485_v2 = vadd.f32 %v484_v61, %v483_v63  ;;  %v693_v61 = vsel %vm391_vm2, %v612_v28, 0.0  ;;  %v1563_v63 = vpop.f32.mrf.mxu2  ;;  %v618_v28 = vmul.f32 %v1318_v16, %v1318_v16 }
  0xf6   :  { %v685_v0 = vsel %vm391_vm2, %v608_v53, 0.0  ;;  %v492_v53 = vsel %vm391_vm2, %v1186_v41, 0.0  ;;  %437 = vst.msk [vmem:[%s1864_s2 + $0x168] sm:$0xff] %vm391_vm2, %v1563_v63  ;;  %v695_v41 = vsel %vm391_vm2, %v613_v55, 0.0  ;;  %v619_v55 = vmul.f32 %v1343_v20, %v1343_v20 }
  0xf7   :  { %v686_v35 = vadd.f32 %v685_v0, %v684_v1  ;;  %v1565_v0 = vpop.f32.mrf.mxu3 }
  0xf8   :  { %449 = vst.msk [vmem:[%s1864_s2 + $0x1c8] sm:$0xff] %vm391_vm2, %v1565_v0 }
  0xfb   :  { %v268_v3 = vpop.f32.mrf.mxu0  ;;  %v1515_v4 = vpop.f32.mrf.mxu1 }
  0xfc   :  { %407 = vst.msk [vmem:[%s1864_s2 + $0x78] sm:$0xff] %vm391_vm2, %v268_v3  ;;  %v486_v8 = vsel %vm391_vm2, %v268_v3, 0.0  ;;  %v609_v11 = vmul.f32 %v268_v3, %v268_v3  ;;  %v615_v3 = vmul.f32 %v1257_v6, %v1257_v6 }
  0xfd   :  { %v487_v38 = vadd.f32 %v486_v8, %v485_v2  ;;  %423 = vst.msk [vmem:[%s1864_s2 + $0xf8] sm:$0xff] %vm391_vm2, %v1515_v4 }
  0xfe   :  { %v687_v42 = vsel %vm391_vm2, %v609_v11, 0.0  ;;  %v697_v11 = vsel %vm391_vm2, %v614_v50, 0.0  ;;  %v699_v40 = vsel %vm391_vm2, %v615_v3, 0.0  ;;  %v620_v50 = vmul.f32 %v1368_v25, %v1368_v25 }
  0xff   :  { %v489_v44 = vadd.f32 %v488_v39, %v487_v38  ;;  %v688_v45 = vadd.f32 %v687_v42, %v686_v35  ;;  %v498_v35 = vsel %vm391_vm2, %v1257_v6, 0.0  ;;  %v616_v38 = vmul.f32 %v1275_v9, %v1275_v9 }
 0x100   :  { %v500_v42 = vsel %vm391_vm2, %v1275_v9, 0.0  ;;  %v502_v6 = vsel %vm391_vm2, %v1293_v12, 0.0 }
 0x101   :  { %v491_v48 = vadd.f32 %v490_v46, %v489_v44  ;;  %v690_v33 = vadd.f32 %v689_v23, %v688_v45  ;;  %v617_v44 = vmul.f32 %v1293_v12, %v1293_v12  ;;  %v701_v46 = vsel %vm391_vm2, %v616_v38, 0.0 }
 0x102   :  { %v504_v12 = vsel %vm391_vm2, %v1318_v16, 0.0 }
 0x103   :  { %v493_v56 = vadd.f32 %v492_v53, %v491_v48  ;;  %v692_v60 = vadd.f32 %v691_v49, %v690_v33  ;;  %v1597_v48 = vpop.f32.mrf.mxu2  ;;  %v1599_v33 = vpop.f32.mrf.mxu3  ;;  %v703_v9 = vsel %vm391_vm2, %v617_v44, 0.0 }
 0x104   :  { %438 = vst.msk [vmem:[%s1864_s2 + $0x170] sm:$0xff] %vm391_vm2, %v1597_v48 }
 0x105   :  { %v495_v1 = vadd.f32 %v494_v32, %v493_v56  ;;  %v694_v2 = vadd.f32 %v693_v61, %v692_v60  ;;  %450 = vst.msk [vmem:[%s1864_s2 + $0x1d0] sm:$0xff] %vm391_vm2, %v1599_v33  ;;  %v705_v61 = vsel %vm391_vm2, %v618_v28, 0.0  ;;  %v506_v32 = vsel %vm391_vm2, %v1343_v20, 0.0 }
 0x106   :  { %v510_v20 = vsel %vm391_vm2, %v1393_v29, 0.0 }
 0x107   :  { %v497_v5 = vadd.f32 %v496_v51, %v495_v1  ;;  %v696_v8 = vadd.f32 %v695_v41, %v694_v2  ;;  %v707_v2 = vsel %vm391_vm2, %v619_v55, 0.0  ;;  %v508_v41 = vsel %vm391_vm2, %v1368_v25, 0.0 }
 0x108   :  { %v621_v51 = vmul.f32 %v1393_v29, %v1393_v29  ;;  %v512_v29 = vsel %vm391_vm2, %v1418_v34, 0.0  ;;  %v626_v55 = vmul.f32 %v1213_v54, %v1213_v54 }
 0x109   :  { %v499_v59 = vadd.f32 %v498_v35, %v497_v5  ;;  %v698_v39 = vadd.f32 %v697_v11, %v696_v8  ;;  %v709_v8 = vsel %vm391_vm2, %v620_v50, 0.0  ;;  %v622_v11 = vmul.f32 %v1418_v34, %v1418_v34 }
 0x10a   :  { %v711_v25 = vsel %vm391_vm2, %v621_v51, 0.0  ;;  %v627_v50 = vmul.f32 %v1233_v62, %v1233_v62  ;;  %v628_v51 = vmul.f32 %v1263_v7, %v1263_v7 }
 0x10b   :  { %v700_v45 = vadd.f32 %v699_v40, %v698_v39  ;;  %v501_v23 = vadd.f32 %v500_v42, %v499_v59  ;;  %v1631_v35 = vpop.f32.mrf.mxu2  ;;  %v1633_v38 = vpop.f32.mrf.mxu3  ;;  %v623_v40 = vmul.f32 %v1450_v52, %v1450_v52 }
 0x10c   :  { %439 = vst.msk [vmem:[%s1864_s2 + $0x178] sm:$0xff] %vm391_vm2, %v1631_v35 }
 0x10d   :  { %v503_v49 = vadd.f32 %v502_v6, %v501_v23  ;;  %v702_v53 = vadd.f32 %v701_v46, %v700_v45  ;;  %451 = vst.msk [vmem:[%s1864_s2 + $0x1d8] sm:$0xff] %vm391_vm2, %v1633_v38  ;;  %v713_v45 = vsel %vm391_vm2, %v622_v11, 0.0  ;;  %v514_v23 = vsel %vm391_vm2, %v1450_v52, 0.0 }
 0x10e   :  { %v624_v46 = vmul.f32 %v1483_v43, %v1483_v43  ;;  %v715_v28 = vsel %vm391_vm2, %v623_v40, 0.0 }
 0x10f   :  { %v505_v56 = vadd.f32 %v504_v12, %v503_v49  ;;  %v704_v60 = vadd.f32 %v703_v9, %v702_v53  ;;  %v516_v49 = vsel %vm391_vm2, %v1483_v43, 0.0  ;;  %v625_v53 = vmul.f32 %v1515_v4, %v1515_v4 }
 0x110   :  { %v717_v52 = vsel %vm391_vm2, %v624_v46, 0.0  ;;  %v520_v43 = vsel %vm391_vm2, %v1213_v54, 0.0  ;;  %v524_v54 = vsel %vm391_vm2, %v1263_v7, 0.0 }
 0x111   :  { %v507_v16 = vadd.f32 %v506_v32, %v505_v56  ;;  %v706_v1 = vadd.f32 %v705_v61, %v704_v60  ;;  %v518_v56 = vsel %vm391_vm2, %v1515_v4, 0.0 }
 0x113   :  { %v509_v3 = vadd.f32 %v508_v41, %v507_v16  ;;  %v708_v5 = vadd.f32 %v707_v2, %v706_v1  ;;  %v1665_v60 = vpop.f32.mrf.mxu3  ;;  %v719_v16 = vsel %vm391_vm2, %v625_v53, 0.0  ;;  %v721_v2 = vsel %vm391_vm2, %v626_v55, 0.0 }
 0x114   :  { %452 = vst.msk [vmem:[%s1864_s2 + $0x1e0] sm:$0xff] %vm391_vm2, %v1665_v60  ;;  %v522_v41 = vsel %vm391_vm2, %v1233_v62, 0.0  ;;  %v526_v62 = vsel %vm391_vm2, %v1281_v10, 0.0 }
 0x115   :  { %v511_v59 = vadd.f32 %v510_v20, %v509_v3  ;;  %v710_v39 = vadd.f32 %v709_v8, %v708_v5  ;;  %v723_v8 = vsel %vm391_vm2, %v627_v50, 0.0  ;;  %v629_v20 = vmul.f32 %v1281_v10, %v1281_v10 }
 0x116   :  { %v631_v10 = vmul.f32 %v1324_v17, %v1324_v17  ;;  %v536_v50 = vsel %vm391_vm2, %v1399_v30, 0.0 }
 0x117   :  { %v513_v42 = vadd.f32 %v512_v29, %v511_v59  ;;  %v712_v44 = vadd.f32 %v711_v25, %v710_v39  ;;  %v725_v39 = vsel %vm391_vm2, %v628_v51, 0.0  ;;  %v630_v25 = vmul.f32 %v1299_v13, %v1299_v13 }
 0x118   :  { %v727_v7 = vsel %vm391_vm2, %v629_v20, 0.0  ;;  %v731_v53 = vsel %vm391_vm2, %v631_v10, 0.0  ;;  %v546_v10 = vsel %vm391_vm2, %v1563_v63, 0.0 }
 0x119   :  { %v714_v34 = vadd.f32 %v713_v45, %v712_v44  ;;  %v515_v6 = vadd.f32 %v514_v23, %v513_v42  ;;  %v528_v44 = vsel %vm391_vm2, %v1299_v13, 0.0  ;;  %v729_v46 = vsel %vm391_vm2, %v630_v25, 0.0 }
 0x11a   :  { %v532_v13 = vsel %vm391_vm2, %v1349_v21, 0.0 }
 0x11b   :  { %v716_v9 = vadd.f32 %v715_v28, %v714_v34  ;;  %v517_v12 = vadd.f32 %v516_v49, %v515_v6  ;;  %v1692_v29 = vpop.f32.mrf.mxu3  ;;  %v530_v34 = vsel %vm391_vm2, %v1324_v17, 0.0  ;;  %v632_v6 = vmul.f32 %v1349_v21, %v1349_v21 }
 0x11c   :  { %453 = vst.msk [vmem:[%s1864_s2 + $0x1e8] sm:$0xff] %vm391_vm2, %v1692_v29  ;;  %v534_v17 = vsel %vm391_vm2, %v1374_v26, 0.0 }
 0x11d   :  { %v718_v61 = vadd.f32 %v717_v52, %v716_v9  ;;  %v519_v32 = vadd.f32 %v518_v56, %v517_v12  ;;  %v633_v9 = vmul.f32 %v1374_v26, %v1374_v26  ;;  %v733_v52 = vsel %vm391_vm2, %v632_v6, 0.0 }
 0x11e   :  { %v634_v56 = vmul.f32 %v1399_v30, %v1399_v30  ;;  %v635_v26 = vmul.f32 %v1424_v36, %v1424_v36  ;;  %v540_v30 = vsel %vm391_vm2, %v1458_v57, 0.0  ;;  %v641_v6 = vmul.f32 %v1631_v35, %v1631_v35 }
 0x11f   :  { %v521_v1 = vadd.f32 %v520_v43, %v519_v32  ;;  %v720_v4 = vadd.f32 %v719_v16, %v718_v61  ;;  %v735_v21 = vsel %vm391_vm2, %v633_v9, 0.0  ;;  %v643_v9 = vmul.f32 %v1326_v18, %v1326_v18 }
 0x121   :  { %v523_v3 = vadd.f32 %v522_v41, %v521_v1  ;;  %v722_v5 = vadd.f32 %v721_v2, %v720_v4  ;;  %v737_v4 = vsel %vm391_vm2, %v634_v56, 0.0  ;;  %v538_v2 = vsel %vm391_vm2, %v1424_v36, 0.0 }
 0x122   :  { %v636_v41 = vmul.f32 %v1458_v57, %v1458_v57  ;;  %v542_v36 = vsel %vm391_vm2, %v1491_v24, 0.0 }
 0x123   :  { %v525_v11 = vadd.f32 %v524_v54, %v523_v3  ;;  %v724_v59 = vadd.f32 %v723_v8, %v722_v5  ;;  %v1719_v61 = vpop.f32.mrf.mxu3  ;;  %v739_v5 = vsel %vm391_vm2, %v635_v26, 0.0  ;;  %v637_v8 = vmul.f32 %v1491_v24, %v1491_v24 }
 0x124   :  { %454 = vst.msk [vmem:[%s1864_s2 + $0x1f0] sm:$0xff] %vm391_vm2, %v1719_v61  ;;  %v639_v24 = vmul.f32 %v1563_v63, %v1563_v63 }
 0x125   :  { %v527_v40 = vadd.f32 %v526_v62, %v525_v11  ;;  %v726_v42 = vadd.f32 %v725_v39, %v724_v59  ;;  %v741_v11 = vsel %vm391_vm2, %v636_v41, 0.0  ;;  %v638_v59 = vmul.f32 %v1524_v15, %v1524_v15 }
 0x126   :  { %v743_v57 = vsel %vm391_vm2, %v637_v8, 0.0  ;;  %v558_v41 = vsel %vm391_vm2, %v1376_v27, 0.0  ;;  %v647_v8 = vmul.f32 %v1426_v37, %v1426_v37 }
 0x127   :  { %v529_v45 = vadd.f32 %v528_v44, %v527_v40  ;;  %v728_v23 = vadd.f32 %v727_v7, %v726_v42  ;;  %v544_v40 = vsel %vm391_vm2, %v1524_v15, 0.0  ;;  %v745_v44 = vsel %vm391_vm2, %v638_v59, 0.0 }
 0x128   :  { %v548_v15 = vsel %vm391_vm2, %v1597_v48, 0.0 }
 0x129   :  { %v531_v28 = vadd.f32 %v530_v34, %v529_v45  ;;  %v730_v49 = vadd.f32 %v729_v46, %v728_v23  ;;  %v640_v45 = vmul.f32 %v1597_v48, %v1597_v48  ;;  %v747_v34 = vsel %vm391_vm2, %v639_v24, 0.0 }
 0x12a   :  { %v552_v48 = vsel %vm391_vm2, %v1301_v14, 0.0 }
 0x12b   :  { %v732_v12 = vadd.f32 %v731_v53, %v730_v49  ;;  %v533_v55 = vadd.f32 %v532_v13, %v531_v28  ;;  %v1746_v39 = vpop.f32.mrf.mxu3  ;;  %v642_v53 = vmul.f32 %v1301_v14, %v1301_v14  ;;  %v749_v63 = vsel %vm391_vm2, %v640_v45, 0.0 }
 0x12c   :  { %455 = vst.msk [vmem:[%s1864_s2 + $0x1f8] sm:$0xff] %vm391_vm2, %v1746_v39  ;;  %v550_v13 = vsel %vm391_vm2, %v1631_v35, 0.0  ;;  %v644_v35 = vmul.f32 %v1351_v22, %v1351_v22  ;;  %v645_v14 = vmul.f32 %v1376_v27, %v1376_v27  ;;  %v562_v27 = vsel %vm391_vm2, %v1426_v37, 0.0  ;;  %s920_s2 = smov [#allocation2]  }
 0x12d   :  { %v535_v32 = vadd.f32 %v534_v17, %v533_v55  ;;  %v734_v43 = vadd.f32 %v733_v52, %v732_v12  ;;  %v751_v52 = vsel %vm391_vm2, %v641_v6, 0.0  ;;  %v566_v37 = vsel %vm391_vm2, %v1493_v47, 0.0  ;;  %s800_s25 = sshll.u32 %s920_s2, 4  ;;  %s801_s25 = int_to_ptr.vmem [resolvable:$true] %s800_s25 }
 0x12e   :  { %v652_v6 = vmul.f32 %v1599_v33, %v1599_v33 }
 0x12f   :  { %v537_v16 = vadd.f32 %v536_v50, %v535_v32  ;;  %v736_v1 = vadd.f32 %v735_v21, %v734_v43  ;;  %v753_v32 = vsel %vm391_vm2, %v642_v53, 0.0  ;;  %v554_v43 = vsel %vm391_vm2, %v1326_v18, 0.0 }
 0x130   :  { %v755_v21 = vsel %vm391_vm2, %v643_v9, 0.0  ;;  %v757_v18 = vsel %vm391_vm2, %v644_v35, 0.0 }
 0x131   :  { %v539_v51 = vadd.f32 %v538_v2, %v537_v16  ;;  %v738_v3 = vadd.f32 %v737_v4, %v736_v1  ;;  %v556_v16 = vsel %vm391_vm2, %v1351_v22, 0.0  ;;  %v919_v2 = vmov 0.0  }
 0x132   :  { %22 = vst.msk [vmem:[#allocation2] sm:$0x1] %vm21_vm3, %v919_v2 }
 0x133   :  { %v541_v54 = vadd.f32 %v540_v30, %v539_v51  ;;  %v740_v20 = vadd.f32 %v739_v5, %v738_v3  ;;  %v646_v51 = vmul.f32 %v1401_v31, %v1401_v31  ;;  %23 = vst.msk [vmem:[#allocation4] sm:$0x1] %vm21_vm3, %v919_v2  ;;  %v759_v5 = vsel %vm391_vm2, %v645_v14, 0.0 }
 0x134   :  { %v560_v30 = vsel %vm391_vm2, %v1401_v31, 0.0  ;;  %v564_v31 = vsel %vm391_vm2, %v1460_v58, 0.0  ;;  %v657_v14 = vmul.f32 %v1746_v39, %v1746_v39 }
 0x135   :  { %v543_v62 = vadd.f32 %v542_v36, %v541_v54  ;;  %v742_v25 = vadd.f32 %v741_v11, %v740_v20  ;;  %v761_v11 = vsel %vm391_vm2, %v646_v51, 0.0  ;;  %v648_v36 = vmul.f32 %v1460_v58, %v1460_v58 }
 0x136   :  { %v568_v58 = vsel %vm391_vm2, %v1526_v19, 0.0  ;;  %v783_v51 = vsel %vm391_vm2, %v657_v14, 0.0 }
 0x137   :  { %v744_v42 = vadd.f32 %v743_v57, %v742_v25  ;;  %v545_v7 = vadd.f32 %v544_v40, %v543_v62  ;;  %v763_v25 = vsel %vm391_vm2, %v647_v8, 0.0  ;;  %v649_v57 = vmul.f32 %v1493_v47, %v1493_v47 }
 0x138   :  { %v570_v47 = vsel %vm391_vm2, %v1565_v0, 0.0 }
 0x139   :  { %v746_v23 = vadd.f32 %v745_v44, %v744_v42  ;;  %v547_v46 = vadd.f32 %v546_v10, %v545_v7  ;;  %v765_v42 = vsel %vm391_vm2, %v648_v36, 0.0  ;;  %v650_v7 = vmul.f32 %v1526_v19, %v1526_v19  ;;  %v456_v36 = vld [vmem:[#allocation2] sm:$0x1] }
 0x13a   :  { %v767_v45 = vsel %vm391_vm2, %v649_v57, 0.0  ;;  %v572_v19 = vsel %vm391_vm2, %v1599_v33, 0.0  ;;  %v576_v33 = vsel %vm391_vm2, %v1665_v60, 0.0 }
 0x13b   :  { %v748_v28 = vadd.f32 %v747_v34, %v746_v23  ;;  %v549_v49 = vadd.f32 %v548_v15, %v547_v46  ;;  %v651_v23 = vmul.f32 %v1565_v0, %v1565_v0  ;;  %v769_v15 = vsel %vm391_vm2, %v650_v7, 0.0 }
 0x13c   :  { %v574_v0 = vsel %vm391_vm2, %v1633_v38, 0.0 }
 0x13d   :  { %v750_v12 = vadd.f32 %v749_v63, %v748_v28  ;;  %v551_v55 = vadd.f32 %v550_v13, %v549_v49  ;;  %v771_v53 = vsel %vm391_vm2, %v651_v23, 0.0  ;;  %v653_v63 = vmul.f32 %v1633_v38, %v1633_v38 }
 0x13e   :  { %v578_v38 = vsel %vm391_vm2, %v1692_v29, 0.0 }
 0x13f   :  { %v553_v17 = vadd.f32 %v552_v48, %v551_v55  ;;  %v752_v56 = vadd.f32 %v751_v52, %v750_v12  ;;  %v773_v12 = vsel %vm391_vm2, %v652_v6, 0.0  ;;  %v654_v55 = vmul.f32 %v1665_v60, %v1665_v60 }
 0x140   :  { %v580_v60 = vsel %vm391_vm2, %v1719_v61, 0.0 }
 0x141   :  { %v555_v50 = vadd.f32 %v554_v43, %v553_v17  ;;  %v754_v26 = vadd.f32 %v753_v32, %v752_v56  ;;  %v775_v17 = vsel %vm391_vm2, %v653_v63, 0.0  ;;  %v655_v56 = vmul.f32 %v1692_v29, %v1692_v29 }
 0x142   :  { %v777_v35 = vsel %vm391_vm2, %v654_v55, 0.0  ;;  %v582_v29 = vsel %vm391_vm2, %v1746_v39, 0.0 }
 0x143   :  { %v557_v1 = vadd.f32 %v556_v16, %v555_v50  ;;  %v756_v4 = vadd.f32 %v755_v21, %v754_v26  ;;  %v656_v21 = vmul.f32 %v1719_v61, %v1719_v61  ;;  %v779_v16 = vsel %vm391_vm2, %v655_v56, 0.0 }
 0x145   :  { %v559_v22 = vadd.f32 %v558_v41, %v557_v1  ;;  %v758_v3 = vadd.f32 %v757_v18, %v756_v4  ;;  %v781_v2 = vsel %vm391_vm2, %v656_v21, 0.0 }
 0x147   :  { %v561_v54 = vadd.f32 %v560_v30, %v559_v22  ;;  %v760_v20 = vadd.f32 %v759_v5, %v758_v3 }
 0x149   :  { %v563_v59 = vadd.f32 %v562_v27, %v561_v54  ;;  %v762_v62 = vadd.f32 %v761_v11, %v760_v20 }
 0x14b   :  { %v764_v40 = vadd.f32 %v763_v25, %v762_v62  ;;  %v565_v24 = vadd.f32 %v564_v31, %v563_v59  ;;  %v593_v62 = vld [vmem:[#allocation4] sm:$0x1] }
 0x14d   :  { %v567_v44 = vadd.f32 %v566_v37, %v565_v24  ;;  %v766_v10 = vadd.f32 %v765_v42, %v764_v40 }
 0x14f   :  { %v569_v46 = vadd.f32 %v568_v58, %v567_v44  ;;  %v768_v34 = vadd.f32 %v767_v45, %v766_v10 }
 0x151   :  { %v571_v28 = vadd.f32 %v570_v47, %v569_v46  ;;  %v770_v49 = vadd.f32 %v769_v15, %v768_v34 }
 0x153   :  { %v573_v13 = vadd.f32 %v572_v19, %v571_v28  ;;  %v772_v9 = vadd.f32 %v771_v53, %v770_v49 }
 0x155   :  { %v575_v48 = vadd.f32 %v574_v0, %v573_v13  ;;  %v774_v52 = vadd.f32 %v773_v12, %v772_v9 }
 0x157   :  { %v776_v32 = vadd.f32 %v775_v17, %v774_v52  ;;  %v577_v43 = vadd.f32 %v576_v33, %v575_v48 }
 0x159   :  { %v778_v50 = vadd.f32 %v777_v35, %v776_v32  ;;  %v579_v26 = vadd.f32 %v578_v38, %v577_v43 }
 0x15b   :  { %v780_v1 = vadd.f32 %v779_v16, %v778_v50  ;;  %v581_v4 = vadd.f32 %v580_v60, %v579_v26 }
 0x15d   :  { %v782_v18 = vadd.f32 %v781_v2, %v780_v1  ;;  %v583_v41 = vadd.f32 %v582_v29, %v581_v4 }
 0x15f   :  { %v584_v22 = vrot.slane %v583_v41, 4  ;;  %v784_v3 = vadd.f32 %v783_v51, %v782_v18 }
 0x161   :  { %v585_v5 = vadd.f32 %v584_v22, %v583_v41  ;;  %v785_v30 = vrot.slane %v784_v3, 4 }
 0x163   :  { %v586_v8 = vrot.slane %v585_v5, 2  ;;  %v786_v61 = vadd.f32 %v785_v30, %v784_v3 }
 0x165   :  { %v587_v54 = vadd.f32 %v586_v8, %v585_v5  ;;  %v787_v20 = vrot.slane %v786_v61, 2 }
 0x167   :  { %v588_v11 = vrot.slane %v587_v54, 1  ;;  %v788_v27 = vadd.f32 %v787_v20, %v786_v61 }
 0x169   :  { %v789_v39 = vrot.slane %v788_v27, 1  ;;  %v589_v59 = vadd.f32 %v588_v11, %v587_v54 }
 0x16b   :  { %v590_v25 = vadd.f32 %v589_v59, %v456_v36  ;;  %v790_v31 = vadd.f32 %v789_v39, %v788_v27 }
 0x16d   :  { %592 = vst.msk [vmem:[#allocation2] sm:$0x1] %vm21_vm3, %v590_v25  ;;  %v791_v57 = vadd.f32 %v790_v31, %v593_v62 }
 0x16e   :  { %805 = dma.vmem_to_hbm [thread:$0]  %s801_s25, 16, %s803_s28, [#allocation3]  }
 0x16f   :  { %792 = vst.msk [vmem:[#allocation4] sm:$0x1] %vm21_vm3, %v791_v57 }
 0x170   :  { %816 = dma.vmem_to_hbm [thread:$0]  %s812_s30, 16, %s814_s7, [#allocation5]  }
 0x171   :  { %915 = dma.done.wait [#allocation3], 16  }
 0x172   :  { %916 = vsyncadd [#allocation3], 4294967280 }
 0x173   :  { %917 = dma.done.wait [#allocation5], 16  }
 0x174   :  { %918 = vsyncadd [#allocation5], 4294967280 }
 0x175   :  { %827 = vsyncpa [#allocation3], 1 }
 0x176   :  { %828 = vsyncpa [#allocation5], 1 }

</bundles_post_ra>
